<compile_context>
chip_gen: v6e
topology: v6e:2x2x1
jax: 0.10.0
libtpu: 0.0.40
codegen_flags: <defaults>
</compile_context>

<pallas_src>
import functools

import jax
import jax.numpy as jnp
from jax.experimental import pallas as pl
from jax.experimental.pallas import tpu as pltpu  # noqa: F401  (TPU backend)

LANE = 128  # TPU vreg lane width; all feature dims are padded to a multiple of this.
SUBLANE = 8


def _round_up(x, m=LANE):
    return ((x + m - 1) // m) * m


def _pad2d(x, rows, cols):
    return jnp.pad(x, ((0, rows - x.shape[0]), (0, cols - x.shape[1])))


# ----------------------------- Pallas kernel -------------------------------

def _attention_head(h, gw, gb, pw, pb):
    """gate -> softmax over nodes -> attention-pooled readout -> linear head.

    h  : [N, Fp]          node features (lane-dense, zero-padded columns)
    gw : [Fp, LANE]       gate weight, real gate vector in column 0, rest zero
    gb : [1, LANE]        gate bias (col 0 real)
    pw : [Fp, OUTp], pb : [1, OUTp]
    returns [1, OUTp]
    """
    n = h.shape[0]
    gate = jnp.dot(h, gw, preferred_element_type=jnp.float32) + gb          # [N, LANE]
    g = gate[:, 0:1]                                                        # [N, 1]
    g = g - jnp.max(g, axis=0, keepdims=True)
    e = jnp.exp(g)
    inv = pl.reciprocal(jnp.sum(e, axis=0, keepdims=True), approx=True)     # EUP slot
    alpha = e * inv                                                         # [N, 1]
    weighted = alpha * h                                                    # [N, Fp] lane bcast
    # Node-axis reduction on the MXU (ones-matvec) instead of a cross-sublane sum.
    ones_row = jnp.ones((1, n), dtype=jnp.float32)
    pooled = jnp.dot(ones_row, weighted, preferred_element_type=jnp.float32)  # [1, Fp]
    return jnp.dot(pooled, pw, preferred_element_type=jnp.float32) + pb       # [1, OUTp]


def _gcn_fused_kernel(*refs, n_layers):
    """Whole GCN forward in one kernel.

    ref layout: a_ref, h_ref,
                [gate_w, gate_b, pred_w, pred_b, conv_w, conv_b] * n_layers,
                gate_w_final, gate_b_final, classify_w, classify_b,
                out_ref
    """
    a_ref, h_ref = refs[0], refs[1]
    layer_refs = refs[2:2 + 6 * n_layers]
    gw_f, gb_f, cw_f, cb_f = refs[2 + 6 * n_layers:2 + 6 * n_layers + 4]
    out_ref = refs[-1]

    a = a_ref[...]
    h = h_ref[...]

    head_sum = jnp.zeros((1, out_ref.shape[1]), dtype=jnp.float32)
    for i in range(n_layers):
        gw, gb, pw, pb, cw, cb = layer_refs[6 * i:6 * i + 6]
        # TODO(synk): nn.Dropout treated as identity (eval-mode semantics).
        # Per-layer prediction head on the *current* features.
        head_sum = head_sum + _attention_head(h, gw[...], gb[...], pw[...], pb[...])
        # GraphConv:  ReLU( A_norm @ (H @ W) + b ) — W applied once per layer.
        hw = jnp.dot(h, cw[...], preferred_element_type=jnp.float32)
        h = jnp.maximum(
            jnp.dot(a, hw, preferred_element_type=jnp.float32) + cb[...], 0.0)

    # Final classify head on the last features, then mean over all heads.
    head_sum = head_sum + _attention_head(h, gw_f[...], gb_f[...], cw_f[...], cb_f[...])
    mean = head_sum * (1.0 / float(n_layers + 1))
    # Full unmasked (8, OUTp) store; row 0 is the real result (sliced outside).
    out_ref[...] = jnp.broadcast_to(mean, out_ref.shape)


# ------------------------------ Wrapper -------------------------------------

def gcn_forward(a_norm, h, params, *, in_dim, hidden_dim, out_dim, n_layers):
    """Mirrors GCN.forward: per-layer attention pooling + prediction head,
    GraphConv updates, final classify head, mean over all heads — all fused
    into a single pallas_call."""
    n, fp = h.shape
    outp = params["classify_w"].shape[1]
    hp = params["conv_w"][0].shape[1]

    args = [a_norm, h]
    nbytes = a_norm.size + h.size
    flops = 0
    for i in range(n_layers):
        args += [params["gate_w"][i], params["gate_b"][i],
                 params["pred_w"][i], params["pred_b"][i],
                 params["conv_w"][i], params["conv_b"][i]]
        d_in = params["conv_w"][i].shape[0]
        nbytes += sum(p.size for p in args[-6:])
        # head: gate matmul + pooling matvec + pred matmul; conv: H@W then A@(HW)
        flops += (2 * n * d_in * LANE + 2 * n * d_in + 2 * d_in * outp
                  + 2 * n * d_in * hp + 2 * n * n * hp)
    args += [params["gate_w"][n_layers], params["gate_b"][n_layers],
             params["classify_w"], params["classify_b"]]
    nbytes += sum(p.size for p in args[-4:])
    flops += 2 * n * hp * LANE + 2 * n * hp + 2 * hp * outp

    cost = pl.CostEstimate(
        flops=int(flops),
        transcendentals=int((n_layers + 1) * (n + 1)),
        bytes_accessed=int(4 * (nbytes + SUBLANE * outp)),
    )

    kernel = functools.partial(_gcn_fused_kernel, n_layers=n_layers)
    out = pl.pallas_call(
        kernel,
        out_shape=jax.ShapeDtypeStruct((SUBLANE, outp), jnp.float32),
        cost_estimate=cost,
    )(*args)
    # Strip sublane/lane padding outside the kernel.
    return out[0:1, :out_dim]


# --------------------------------- Setup ------------------------------------

def init_params(key, in_dim, hidden_dim, out_dim, n_layers):
    """Random params generated at true shapes, then zero-padded to lane-dense shapes."""
    in_p, hid_p, out_p = _round_up(in_dim), _round_up(hidden_dim), _round_up(out_dim)

    def nrm(k, shape, scale=0.1):
        return scale * jax.random.normal(k, shape, dtype=jnp.float32)

    keys = iter(jax.random.split(key, 8 * (n_layers + 2)))
    params = {"conv_w": [], "conv_b": [], "pred_w": [], "pred_b": [],
              "gate_w": [], "gate_b": []}

    dims = [in_dim] + [hidden_dim] * n_layers
    dims_p = [in_p] + [hid_p] * n_layers
    for i in range(n_layers):
        w = nrm(next(keys), (dims[i], dims[i + 1]))
        b = nrm(next(keys), (1, dims[i + 1]))
        params["conv_w"].append(_pad2d(w, dims_p[i], dims_p[i + 1]))
        params["conv_b"].append(_pad2d(b, 1, dims_p[i + 1]))

    # per-layer prediction linears + attention gates (n_layers + 1 of each)
    for layer in range(n_layers + 1):
        d = in_dim if layer == 0 else hidden_dim
        d_p = in_p if layer == 0 else hid_p
        pw = nrm(next(keys), (d, out_dim))
        pb = nrm(next(keys), (1, out_dim))
        gw = nrm(next(keys), (d, 1))
        gb = nrm(next(keys), (1, 1))
        params["pred_w"].append(_pad2d(pw, d_p, out_p))
        params["pred_b"].append(_pad2d(pb, 1, out_p))
        params["gate_w"].append(_pad2d(gw, d_p, LANE))   # real gate in column 0
        params["gate_b"].append(_pad2d(gb, 1, LANE))

    params["classify_w"] = _pad2d(nrm(next(keys), (hidden_dim, out_dim)), hid_p, out_p)
    params["classify_b"] = _pad2d(nrm(next(keys), (1, out_dim)), 1, out_p)
    return params


def make_normalized_adjacency(key, n_nodes):
    # random undirected graph with self-loops, then D^{-1/2} A D^{-1/2}
    upper = (jax.random.uniform(key, (n_nodes, n_nodes)) < 0.3).astype(jnp.float32)
    a = jnp.triu(upper, 1)
    a = a + a.T + jnp.eye(n_nodes, dtype=jnp.float32)
    deg = jnp.sum(a, axis=1)
    d_inv_sqrt = 1.0 / jnp.sqrt(deg)
    return a * d_inv_sqrt[:, None] * d_inv_sqrt[None, :]


if __name__ == "__main__":
    N_NODES, IN_DIM, HIDDEN_DIM, OUT_DIM, N_LAYERS = 16, 8, 32, 4, 2

    key = jax.random.PRNGKey(0)
    k_feat, k_adj, k_param = jax.random.split(key, 3)

    h0 = jax.random.normal(k_feat, (N_NODES, IN_DIM), dtype=jnp.float32)
    h0 = _pad2d(h0, N_NODES, _round_up(IN_DIM))        # lane-dense node features
    a_norm = make_normalized_adjacency(k_adj, N_NODES)
    params = init_params(k_param, IN_DIM, HIDDEN_DIM, OUT_DIM, N_LAYERS)

    out = gcn_forward(a_norm, h0, params,
                      in_dim=IN_DIM, hidden_dim=HIDDEN_DIM,
                      out_dim=OUT_DIM, n_layers=N_LAYERS)
    out = jax.block_until_ready(out)
    assert out.shape == (1, OUT_DIM)
    print("KERNEL_OK")
</pallas_src>

<mosaic_0001>
module attributes {stable_mosaic.version = 11 : i64} {
  func.func @_gcn_fused_kernel(%arg0: memref<16x16xf32, #tpu.memory_space<vmem>>, %arg1: memref<16x128xf32, #tpu.memory_space<vmem>>, %arg2: memref<128x128xf32, #tpu.memory_space<vmem>>, %arg3: memref<1x128xf32, #tpu.memory_space<vmem>>, %arg4: memref<128x128xf32, #tpu.memory_space<vmem>>, %arg5: memref<1x128xf32, #tpu.memory_space<vmem>>, %arg6: memref<128x128xf32, #tpu.memory_space<vmem>>, %arg7: memref<1x128xf32, #tpu.memory_space<vmem>>, %arg8: memref<128x128xf32, #tpu.memory_space<vmem>>, %arg9: memref<1x128xf32, #tpu.memory_space<vmem>>, %arg10: memref<128x128xf32, #tpu.memory_space<vmem>>, %arg11: memref<1x128xf32, #tpu.memory_space<vmem>>, %arg12: memref<128x128xf32, #tpu.memory_space<vmem>>, %arg13: memref<1x128xf32, #tpu.memory_space<vmem>>, %arg14: memref<128x128xf32, #tpu.memory_space<vmem>>, %arg15: memref<1x128xf32, #tpu.memory_space<vmem>>, %arg16: memref<128x128xf32, #tpu.memory_space<vmem>>, %arg17: memref<1x128xf32, #tpu.memory_space<vmem>>, %arg18: memref<8x128xf32, #tpu.memory_space<vmem>>) attributes {dimension_semantics = [], scalar_prefetch = 0 : i64, scratch_operands = 0 : i64, tpu.core_type = #tpu.core_type<tc>} {
    %c0 = arith.constant 0 : index
    %c0_0 = arith.constant 0 : index
    %0 = vector.load %arg0[%c0, %c0_0] : memref<16x16xf32, #tpu.memory_space<vmem>>, vector<16x16xf32>
    %c0_1 = arith.constant 0 : index
    %c0_2 = arith.constant 0 : index
    %1 = vector.load %arg1[%c0_1, %c0_2] : memref<16x128xf32, #tpu.memory_space<vmem>>, vector<16x128xf32>
    %cst = arith.constant 0.000000e+00 : f32
    %2 = vector.broadcast %cst : f32 to vector<1x128xf32>
    %c0_3 = arith.constant 0 : index
    %c0_4 = arith.constant 0 : index
    %3 = vector.load %arg2[%c0_3, %c0_4] : memref<128x128xf32, #tpu.memory_space<vmem>>, vector<128x128xf32>
    %c0_5 = arith.constant 0 : index
    %c0_6 = arith.constant 0 : index
    %4 = vector.load %arg3[%c0_5, %c0_6] : memref<1x128xf32, #tpu.memory_space<vmem>>, vector<1x128xf32>
    %c0_7 = arith.constant 0 : index
    %c0_8 = arith.constant 0 : index
    %5 = vector.load %arg4[%c0_7, %c0_8] : memref<128x128xf32, #tpu.memory_space<vmem>>, vector<128x128xf32>
    %c0_9 = arith.constant 0 : index
    %c0_10 = arith.constant 0 : index
    %6 = vector.load %arg5[%c0_9, %c0_10] : memref<1x128xf32, #tpu.memory_space<vmem>>, vector<1x128xf32>
    %cst_11 = arith.constant dense<0.000000e+00> : vector<16x128xf32>
    %7 = tpu.matmul %1, %3, %cst_11 {dimension_numbers = #tpu.dot_dimension_numbers<[1], [0], [0], [1], [0, 0, 1, 1], [], []>} : vector<16x128xf32>, vector<128x128xf32>, vector<16x128xf32> -> vector<16x128xf32>
    %8 = vector.broadcast %4 : vector<1x128xf32> to vector<16x128xf32>
    %9 = arith.addf %7, %8 : vector<16x128xf32>
    %10 = vector.extract_strided_slice %9 {offsets = [0, 0], sizes = [16, 1], strides = [1, 1]} : vector<16x128xf32> to vector<16x1xf32>
    %cst_12 = arith.constant dense<0xFF800000> : vector<1xf32>
    %11 = vector.multi_reduction <maximumf>, %10, %cst_12 [0] : vector<16x1xf32> to vector<1xf32>
    %12 = vector.shape_cast %11 : vector<1xf32> to vector<1x1xf32>
    %13 = vector.broadcast %12 : vector<1x1xf32> to vector<16x1xf32>
    %14 = arith.subf %10, %13 : vector<16x1xf32>
    %15 = math.exp %14 : vector<16x1xf32>
    %cst_13 = arith.constant dense<0.000000e+00> : vector<1xf32>
    %16 = vector.multi_reduction <add>, %15, %cst_13 [0] : vector<16x1xf32> to vector<1xf32>
    %17 = vector.shape_cast %16 : vector<1xf32> to vector<1x1xf32>
    %18 = tpu.reciprocal %17 {approx = true} : vector<1x1xf32> -> vector<1x1xf32>
    %19 = vector.broadcast %18 : vector<1x1xf32> to vector<16x1xf32>
    %20 = arith.mulf %15, %19 : vector<16x1xf32>
    %21 = vector.broadcast %20 : vector<16x1xf32> to vector<16x128xf32>
    %22 = arith.mulf %21, %1 : vector<16x128xf32>
    %cst_14 = arith.constant 1.000000e+00 : f32
    %23 = vector.broadcast %cst_14 : f32 to vector<1x16xf32>
    %cst_15 = arith.constant dense<0.000000e+00> : vector<1x128xf32>
    %24 = tpu.matmul %23, %22, %cst_15 {dimension_numbers = #tpu.dot_dimension_numbers<[1], [0], [0], [1], [0, 0, 1, 1], [], []>} : vector<1x16xf32>, vector<16x128xf32>, vector<1x128xf32> -> vector<1x128xf32>
    %cst_16 = arith.constant dense<0.000000e+00> : vector<1x128xf32>
    %25 = tpu.matmul %24, %5, %cst_16 {dimension_numbers = #tpu.dot_dimension_numbers<[1], [0], [0], [1], [0, 0, 1, 1], [], []>} : vector<1x128xf32>, vector<128x128xf32>, vector<1x128xf32> -> vector<1x128xf32>
    %26 = arith.addf %25, %6 : vector<1x128xf32>
    %27 = arith.addf %2, %26 : vector<1x128xf32>
    %c0_17 = arith.constant 0 : index
    %c0_18 = arith.constant 0 : index
    %28 = vector.load %arg6[%c0_17, %c0_18] : memref<128x128xf32, #tpu.memory_space<vmem>>, vector<128x128xf32>
    %cst_19 = arith.constant dense<0.000000e+00> : vector<16x128xf32>
    %29 = tpu.matmul %1, %28, %cst_19 {dimension_numbers = #tpu.dot_dimension_numbers<[1], [0], [0], [1], [0, 0, 1, 1], [], []>} : vector<16x128xf32>, vector<128x128xf32>, vector<16x128xf32> -> vector<16x128xf32>
    %cst_20 = arith.constant dense<0.000000e+00> : vector<16x128xf32>
    %30 = tpu.matmul %0, %29, %cst_20 {dimension_numbers = #tpu.dot_dimension_numbers<[1], [0], [0], [1], [0, 0, 1, 1], [], []>} : vector<16x16xf32>, vector<16x128xf32>, vector<16x128xf32> -> vector<16x128xf32>
    %c0_21 = arith.constant 0 : index
    %c0_22 = arith.constant 0 : index
    %31 = vector.load %arg7[%c0_21, %c0_22] : memref<1x128xf32, #tpu.memory_space<vmem>>, vector<1x128xf32>
    %32 = vector.broadcast %31 : vector<1x128xf32> to vector<16x128xf32>
    %33 = arith.addf %30, %32 : vector<16x128xf32>
    %cst_23 = arith.constant 0.000000e+00 : f32
    %34 = vector.broadcast %cst_23 : f32 to vector<16x128xf32>
    %35 = arith.maximumf %33, %34 : vector<16x128xf32>
    %c0_24 = arith.constant 0 : index
    %c0_25 = arith.constant 0 : index
    %36 = vector.load %arg8[%c0_24, %c0_25] : memref<128x128xf32, #tpu.memory_space<vmem>>, vector<128x128xf32>
    %c0_26 = arith.constant 0 : index
    %c0_27 = arith.constant 0 : index
    %37 = vector.load %arg9[%c0_26, %c0_27] : memref<1x128xf32, #tpu.memory_space<vmem>>, vector<1x128xf32>
    %c0_28 = arith.constant 0 : index
    %c0_29 = arith.constant 0 : index
    %38 = vector.load %arg10[%c0_28, %c0_29] : memref<128x128xf32, #tpu.memory_space<vmem>>, vector<128x128xf32>
    %c0_30 = arith.constant 0 : index
    %c0_31 = arith.constant 0 : index
    %39 = vector.load %arg11[%c0_30, %c0_31] : memref<1x128xf32, #tpu.memory_space<vmem>>, vector<1x128xf32>
    %cst_32 = arith.constant dense<0.000000e+00> : vector<16x128xf32>
    %40 = tpu.matmul %35, %36, %cst_32 {dimension_numbers = #tpu.dot_dimension_numbers<[1], [0], [0], [1], [0, 0, 1, 1], [], []>} : vector<16x128xf32>, vector<128x128xf32>, vector<16x128xf32> -> vector<16x128xf32>
    %41 = vector.broadcast %37 : vector<1x128xf32> to vector<16x128xf32>
    %42 = arith.addf %40, %41 : vector<16x128xf32>
    %43 = vector.extract_strided_slice %42 {offsets = [0, 0], sizes = [16, 1], strides = [1, 1]} : vector<16x128xf32> to vector<16x1xf32>
    %cst_33 = arith.constant dense<0xFF800000> : vector<1xf32>
    %44 = vector.multi_reduction <maximumf>, %43, %cst_33 [0] : vector<16x1xf32> to vector<1xf32>
    %45 = vector.shape_cast %44 : vector<1xf32> to vector<1x1xf32>
    %46 = vector.broadcast %45 : vector<1x1xf32> to vector<16x1xf32>
    %47 = arith.subf %43, %46 : vector<16x1xf32>
    %48 = math.exp %47 : vector<16x1xf32>
    %cst_34 = arith.constant dense<0.000000e+00> : vector<1xf32>
    %49 = vector.multi_reduction <add>, %48, %cst_34 [0] : vector<16x1xf32> to vector<1xf32>
    %50 = vector.shape_cast %49 : vector<1xf32> to vector<1x1xf32>
    %51 = tpu.reciprocal %50 {approx = true} : vector<1x1xf32> -> vector<1x1xf32>
    %52 = vector.broadcast %51 : vector<1x1xf32> to vector<16x1xf32>
    %53 = arith.mulf %48, %52 : vector<16x1xf32>
    %54 = vector.broadcast %53 : vector<16x1xf32> to vector<16x128xf32>
    %55 = arith.mulf %54, %35 : vector<16x128xf32>
    %cst_35 = arith.constant 1.000000e+00 : f32
    %56 = vector.broadcast %cst_35 : f32 to vector<1x16xf32>
    %cst_36 = arith.constant dense<0.000000e+00> : vector<1x128xf32>
    %57 = tpu.matmul %56, %55, %cst_36 {dimension_numbers = #tpu.dot_dimension_numbers<[1], [0], [0], [1], [0, 0, 1, 1], [], []>} : vector<1x16xf32>, vector<16x128xf32>, vector<1x128xf32> -> vector<1x128xf32>
    %cst_37 = arith.constant dense<0.000000e+00> : vector<1x128xf32>
    %58 = tpu.matmul %57, %38, %cst_37 {dimension_numbers = #tpu.dot_dimension_numbers<[1], [0], [0], [1], [0, 0, 1, 1], [], []>} : vector<1x128xf32>, vector<128x128xf32>, vector<1x128xf32> -> vector<1x128xf32>
    %59 = arith.addf %58, %39 : vector<1x128xf32>
    %60 = arith.addf %27, %59 : vector<1x128xf32>
    %c0_38 = arith.constant 0 : index
    %c0_39 = arith.constant 0 : index
    %61 = vector.load %arg12[%c0_38, %c0_39] : memref<128x128xf32, #tpu.memory_space<vmem>>, vector<128x128xf32>
    %cst_40 = arith.constant dense<0.000000e+00> : vector<16x128xf32>
    %62 = tpu.matmul %35, %61, %cst_40 {dimension_numbers = #tpu.dot_dimension_numbers<[1], [0], [0], [1], [0, 0, 1, 1], [], []>} : vector<16x128xf32>, vector<128x128xf32>, vector<16x128xf32> -> vector<16x128xf32>
    %cst_41 = arith.constant dense<0.000000e+00> : vector<16x128xf32>
    %63 = tpu.matmul %0, %62, %cst_41 {dimension_numbers = #tpu.dot_dimension_numbers<[1], [0], [0], [1], [0, 0, 1, 1], [], []>} : vector<16x16xf32>, vector<16x128xf32>, vector<16x128xf32> -> vector<16x128xf32>
    %c0_42 = arith.constant 0 : index
    %c0_43 = arith.constant 0 : index
    %64 = vector.load %arg13[%c0_42, %c0_43] : memref<1x128xf32, #tpu.memory_space<vmem>>, vector<1x128xf32>
    %65 = vector.broadcast %64 : vector<1x128xf32> to vector<16x128xf32>
    %66 = arith.addf %63, %65 : vector<16x128xf32>
    %cst_44 = arith.constant 0.000000e+00 : f32
    %67 = vector.broadcast %cst_44 : f32 to vector<16x128xf32>
    %68 = arith.maximumf %66, %67 : vector<16x128xf32>
    %c0_45 = arith.constant 0 : index
    %c0_46 = arith.constant 0 : index
    %69 = vector.load %arg14[%c0_45, %c0_46] : memref<128x128xf32, #tpu.memory_space<vmem>>, vector<128x128xf32>
    %c0_47 = arith.constant 0 : index
    %c0_48 = arith.constant 0 : index
    %70 = vector.load %arg15[%c0_47, %c0_48] : memref<1x128xf32, #tpu.memory_space<vmem>>, vector<1x128xf32>
    %c0_49 = arith.constant 0 : index
    %c0_50 = arith.constant 0 : index
    %71 = vector.load %arg16[%c0_49, %c0_50] : memref<128x128xf32, #tpu.memory_space<vmem>>, vector<128x128xf32>
    %c0_51 = arith.constant 0 : index
    %c0_52 = arith.constant 0 : index
    %72 = vector.load %arg17[%c0_51, %c0_52] : memref<1x128xf32, #tpu.memory_space<vmem>>, vector<1x128xf32>
    %cst_53 = arith.constant dense<0.000000e+00> : vector<16x128xf32>
    %73 = tpu.matmul %68, %69, %cst_53 {dimension_numbers = #tpu.dot_dimension_numbers<[1], [0], [0], [1], [0, 0, 1, 1], [], []>} : vector<16x128xf32>, vector<128x128xf32>, vector<16x128xf32> -> vector<16x128xf32>
    %74 = vector.broadcast %70 : vector<1x128xf32> to vector<16x128xf32>
    %75 = arith.addf %73, %74 : vector<16x128xf32>
    %76 = vector.extract_strided_slice %75 {offsets = [0, 0], sizes = [16, 1], strides = [1, 1]} : vector<16x128xf32> to vector<16x1xf32>
    %cst_54 = arith.constant dense<0xFF800000> : vector<1xf32>
    %77 = vector.multi_reduction <maximumf>, %76, %cst_54 [0] : vector<16x1xf32> to vector<1xf32>
    %78 = vector.shape_cast %77 : vector<1xf32> to vector<1x1xf32>
    %79 = vector.broadcast %78 : vector<1x1xf32> to vector<16x1xf32>
    %80 = arith.subf %76, %79 : vector<16x1xf32>
    %81 = math.exp %80 : vector<16x1xf32>
    %cst_55 = arith.constant dense<0.000000e+00> : vector<1xf32>
    %82 = vector.multi_reduction <add>, %81, %cst_55 [0] : vector<16x1xf32> to vector<1xf32>
    %83 = vector.shape_cast %82 : vector<1xf32> to vector<1x1xf32>
    %84 = tpu.reciprocal %83 {approx = true} : vector<1x1xf32> -> vector<1x1xf32>
    %85 = vector.broadcast %84 : vector<1x1xf32> to vector<16x1xf32>
    %86 = arith.mulf %81, %85 : vector<16x1xf32>
    %87 = vector.broadcast %86 : vector<16x1xf32> to vector<16x128xf32>
    %88 = arith.mulf %87, %68 : vector<16x128xf32>
    %cst_56 = arith.constant 1.000000e+00 : f32
    %89 = vector.broadcast %cst_56 : f32 to vector<1x16xf32>
    %cst_57 = arith.constant dense<0.000000e+00> : vector<1x128xf32>
    %90 = tpu.matmul %89, %88, %cst_57 {dimension_numbers = #tpu.dot_dimension_numbers<[1], [0], [0], [1], [0, 0, 1, 1], [], []>} : vector<1x16xf32>, vector<16x128xf32>, vector<1x128xf32> -> vector<1x128xf32>
    %cst_58 = arith.constant dense<0.000000e+00> : vector<1x128xf32>
    %91 = tpu.matmul %90, %71, %cst_58 {dimension_numbers = #tpu.dot_dimension_numbers<[1], [0], [0], [1], [0, 0, 1, 1], [], []>} : vector<1x128xf32>, vector<128x128xf32>, vector<1x128xf32> -> vector<1x128xf32>
    %92 = arith.addf %91, %72 : vector<1x128xf32>
    %93 = arith.addf %60, %92 : vector<1x128xf32>
    %cst_59 = arith.constant 0.333333343 : f32
    %94 = vector.broadcast %cst_59 : f32 to vector<1x128xf32>
    %95 = arith.mulf %93, %94 : vector<1x128xf32>
    %96 = vector.shape_cast %95 : vector<1x128xf32> to vector<1x128xf32>
    %97 = vector.broadcast %96 : vector<1x128xf32> to vector<8x128xf32>
    %c0_60 = arith.constant 0 : index
    %c0_61 = arith.constant 0 : index
    %98 = vector.load %arg18[%c0_60, %c0_61] : memref<8x128xf32, #tpu.memory_space<vmem>>, vector<8x128xf32>
    tpu.vector_store %arg18[%c0_60, %c0_61], %97 {strides = array<i32>} : memref<8x128xf32, #tpu.memory_space<vmem>>, vector<8x128xf32>,
    return
  }
}

</mosaic_0001>

<bundles_post_ra>
// kernel: tpu_custom_call.1
= control target key start
LH: loop header
LB: loop body
LE: loop exit
PB: predicated region body
PF: predicated region fallthrough
CT: control target
= control target key end

     0   :  { %s2549_s0 = inlined_call_operand.hbm [shape: f32[16,16], index: 0, kind: input, shape index: {}]   ;;  %s2550_s1 = inlined_call_operand.hbm [shape: f32[16,128], index: 1, kind: input, shape index: {}]   ;;  %s2551_s2 = inlined_call_operand.hbm [shape: f32[128,128], index: 2, kind: input, shape index: {}]   ;;  %s2552_s3 = inlined_call_operand.vmem [shape: f32[1,128], index: 3, kind: input, shape index: {}]   ;;  %s2553_s4 = inlined_call_operand.hbm [shape: f32[128,128], index: 4, kind: input, shape index: {}]   ;;  %s2554_s5 = inlined_call_operand.vmem [shape: f32[1,128], index: 5, kind: input, shape index: {}]   ;;  %s2555_s6 = inlined_call_operand.hbm [shape: f32[128,128], index: 6, kind: input, shape index: {}]   ;;  %s2556_s7 = inlined_call_operand.vmem [shape: f32[1,128], index: 7, kind: input, shape index: {}]   ;;  %s2557_s8 = inlined_call_operand.hbm [shape: f32[128,128], index: 8, kind: input, shape index: {}]   ;;  %s2558_s9 = inlined_call_operand.vmem [shape: f32[1,128], index: 9, kind: input, shape index: {}]   ;;  %s2559_s10 = inlined_call_operand.hbm [shape: f32[128,128], index: 10, kind: input, shape index: {}]   ;;  %s2560_s11 = inlined_call_operand.vmem [shape: f32[1,128], index: 11, kind: input, shape index: {}]   ;;  %s2561_s12 = inlined_call_operand.hbm [shape: f32[128,128], index: 12, kind: input, shape index: {}]   ;;  %s2562_s13 = inlined_call_operand.vmem [shape: f32[1,128], index: 13, kind: input, shape index: {}]   ;;  %s2563_s14 = inlined_call_operand.hbm [shape: f32[128,128], index: 14, kind: input, shape index: {}]   ;;  %s2564_s15 = inlined_call_operand.vmem [shape: f32[1,128], index: 15, kind: input, shape index: {}]   ;;  %s2565_s16 = inlined_call_operand.hbm [shape: f32[128,128], index: 16, kind: input, shape index: {}]   ;;  %s2566_s17 = inlined_call_operand.vmem [shape: f32[1,128], index: 17, kind: input, shape index: {}]   ;;  %s2567_s18 = inlined_call_operand.hbm [shape: f32[8,128], index: 18, kind: output, shape index: {}]  }
   0x1   :  { %2568 = sst [smem:[#allocation27_spill]] %s2549_s0 }
   0x2   :  { %2569 = sst [smem:[#allocation28_spill]] %s2550_s1 }
   0x3   :  { %2570 = sst [smem:[#allocation29_spill]] %s2551_s2 }
   0x4   :  { %23 = vsyncpa [#allocation3], 0 }
   0x5   :  { %24 = vsyncpa [#allocation6], 0 }
   0x6   :  { %25 = vsyncpa [#allocation9], 0 }
   0x7   :  { %26 = vsyncpa [#allocation12], 0 }
   0x8   :  { %27 = vsyncpa [#allocation15], 0 }
   0x9   :  { %28 = vsyncpa [#allocation18], 0 }
   0xa   :  { %29 = vsyncpa [#allocation4], 0  ;;  %s2228_s27 = smov [#allocation5]   ;;  %s2229_s29 = smov [#allocation8]  }
   0xb   :  { %s47_s28 = sshll.u32 %s2228_s27, 4  ;;  %s73_s30 = sshll.u32 %s2229_s29, 4  ;;  %s48_s28 = int_to_ptr.vmem [resolvable:$true] %s47_s28  ;;  %s74_s30 = int_to_ptr.vmem [resolvable:$true] %s73_s30 }
   0xc   :  { %s2002_s0 = scalar_lea.vmem %s48_s28, 256  ;;  %p2007_p1 = scmp.lt.s32.totalorder %s48_s28, %s48_s28 }
   0xd   :  { %p2003_p0 = scmp.ne.s32.totalorder %s48_s28, %s2002_s0  ;;  %p2008_p2 = scmp.lt.s32.totalorder %s2002_s0, %s2002_s0 }
   0xf   :  { %p2009_p3 = por %p2008_p2, %p2007_p1 }
  0x11   :  { %p2010_p4 = pnand %p2009_p3, %p2003_p0 }
  0x13   :  { %2013 = shalt.err (!%p2010_p4)
}
  0x14   :  { %s2230_s19 = smov 128   ;;  %s2231_s1 = smov 8  }
  0x15   :  { %s2571_s22 = sld [smem:[#allocation28_spill]]  ;;  %s2022_s2 = scalar_lea.vmem %s74_s30, 2048 }
  0x16   :  { %p2023_p5 = scmp.ne.s32.totalorder %s74_s30, %s2022_s2  ;;  %p2027_p6 = scmp.lt.s32.totalorder %s74_s30, %s74_s30 }
  0x17   :  { %p2028_p7 = scmp.lt.s32.totalorder %s2022_s2, %s2022_s2 }
  0x19   :  { %p2029_p8 = por %p2028_p7, %p2027_p6 }
  0x1b   :  { %53 = dma.hbm_to_vmem [thread:$0]  %s2571_s22, 256, %s48_s28, [#allocation6], %s2230_s19, %s2230_s19, %s2231_s1  }
  0x1c   :  { %p2030_p9 = pnand %p2029_p8, %p2023_p5 }
  0x1e   :  { %2033 = shalt.err (!%p2030_p9)
}
  0x1f   :  { %79 = dma.hbm_to_vmem [thread:$0]  %s2553_s4, 2048, %s74_s30, [#allocation9], %s2230_s19, %s2230_s19, %s2231_s1  }
  0x20   :  { %s2232_s25 = smov [#allocation11]   ;;  %s2233_s27 = smov [#allocation14]  }
  0x21   :  { %s101_s26 = sshll.u32 %s2232_s25, 4  ;;  %s129_s29 = sshll.u32 %s2233_s27, 4  ;;  %s102_s26 = int_to_ptr.vmem [resolvable:$true] %s101_s26  ;;  %s130_s29 = int_to_ptr.vmem [resolvable:$true] %s129_s29 }
  0x22   :  { %s2042_s28 = scalar_lea.vmem %s102_s26, 2048  ;;  %p2047_p11 = scmp.lt.s32.totalorder %s102_s26, %s102_s26 }
  0x23   :  { %p2043_p10 = scmp.ne.s32.totalorder %s102_s26, %s2042_s28  ;;  %p2048_p12 = scmp.lt.s32.totalorder %s2042_s28, %s2042_s28 }
  0x25   :  { %p2049_p13 = por %p2048_p12, %p2047_p11 }
  0x27   :  { %p2050_p0 = pnand %p2049_p13, %p2043_p10 }
  0x29   :  { %2053 = shalt.err (!%p2050_p0)
}
  0x2a   :  { %107 = dma.hbm_to_vmem [thread:$0]  %s2557_s8, 2048, %s102_s26, [#allocation12], %s2230_s19, %s2230_s19, %s2231_s1  }
  0x2b   :  { %s2062_s4 = scalar_lea.vmem %s130_s29, 2048  ;;  %p2067_p2 = scmp.lt.s32.totalorder %s130_s29, %s130_s29 }
  0x2c   :  { %p2063_p1 = scmp.ne.s32.totalorder %s130_s29, %s2062_s4  ;;  %p2068_p3 = scmp.lt.s32.totalorder %s2062_s4, %s2062_s4 }
  0x2e   :  { %p2069_p4 = por %p2068_p3, %p2067_p2 }
  0x30   :  { %p2070_p5 = pnand %p2069_p4, %p2063_p1 }
  0x32   :  { %2073 = shalt.err (!%p2070_p5)
}
  0x33   :  { %135 = dma.hbm_to_vmem [thread:$0]  %s2561_s12, 2048, %s130_s29, [#allocation15], %s2230_s19, %s2230_s19, %s2231_s1  }
  0x34   :  { %s2234_s22 = smov [#allocation2]   ;;  %s2235_s23 = smov [#allocation7]  }
  0x35   :  { %s35_s2 = sshll.u32 %s2234_s22, 4  ;;  %s59_s24 = sshll.u32 %s2235_s23, 4  ;;  %s36_s2 = int_to_ptr.vmem [resolvable:$true] %s35_s2  ;;  %s60_s24 = int_to_ptr.vmem [resolvable:$true] %s59_s24 }
  0x36   :  { %s2082_s8 = scalar_lea.vmem %s36_s2, 256  ;;  %p2087_p7 = scmp.lt.s32.totalorder %s36_s2, %s36_s2 }
  0x37   :  { %p2083_p6 = scmp.ne.s32.totalorder %s36_s2, %s2082_s8  ;;  %p2088_p8 = scmp.lt.s32.totalorder %s2082_s8, %s2082_s8 }
  0x39   :  { %p2089_p9 = por %p2088_p8, %p2087_p7 }
  0x3b   :  { %p2090_p10 = pnand %p2089_p9, %p2083_p6 }
  0x3d   :  { %2093 = shalt.err (!%p2090_p10)
}
  0x3e   :  { %s2572_s27 = sld [smem:[#allocation27_spill]]  ;;  %s2102_s12 = scalar_lea.vmem %s60_s24, 2048 }
  0x3f   :  { %p2103_p11 = scmp.ne.s32.totalorder %s60_s24, %s2102_s12  ;;  %p2107_p12 = scmp.lt.s32.totalorder %s60_s24, %s60_s24 }
  0x40   :  { %p2108_p13 = scmp.lt.s32.totalorder %s2102_s12, %s2102_s12 }
  0x42   :  { %p2109_p0 = por %p2108_p13, %p2107_p12 }
  0x44   :  { %41 = dma.hbm_to_vmem [thread:$0]  %s2572_s27, 256, %s36_s2, [#allocation3], %s2230_s19, %s2230_s19, %s2231_s1  }
  0x45   :  { %p2110_p1 = pnand %p2109_p0, %p2103_p11 }
  0x47   :  { %2113 = shalt.err (!%p2110_p1)
}
  0x48   :  { %s2573_s0 = sld [smem:[#allocation29_spill]]  ;;  %s2236_s20 = smov [#allocation10]  }
  0x49   :  { %s87_s4 = sshll.u32 %s2236_s20, 4  ;;  %s2237_s30 = smov [#allocation13]   ;;  %s88_s4 = int_to_ptr.vmem [resolvable:$true] %s87_s4 }
  0x4a   :  { %s115_s21 = sshll.u32 %s2237_s30, 4  ;;  %s2122_s22 = scalar_lea.vmem %s88_s4, 2048  ;;  %s116_s21 = int_to_ptr.vmem [resolvable:$true] %s115_s21 }
  0x4b   :  { %p2123_p2 = scmp.ne.s32.totalorder %s88_s4, %s2122_s22  ;;  %p2127_p3 = scmp.lt.s32.totalorder %s88_s4, %s88_s4 }
  0x4c   :  { %p2128_p4 = scmp.lt.s32.totalorder %s2122_s22, %s2122_s22 }
  0x4e   :  { %65 = dma.hbm_to_vmem [thread:$0]  %s2573_s0, 2048, %s60_s24, [#allocation6], %s2230_s19, %s2230_s19, %s2231_s1  }
  0x4f   :  { %p2129_p5 = por %p2128_p4, %p2127_p3 }
  0x51   :  { %p2130_p6 = pnand %p2129_p5, %p2123_p2 }
  0x53   :  { %2133 = shalt.err (!%p2130_p6)
}
  0x54   :  { %93 = dma.hbm_to_vmem [thread:$0]  %s2555_s6, 2048, %s88_s4, [#allocation9], %s2230_s19, %s2230_s19, %s2231_s1  }
  0x55   :  { %s2142_s24 = scalar_lea.vmem %s116_s21, 2048  ;;  %p2147_p8 = scmp.lt.s32.totalorder %s116_s21, %s116_s21 }
  0x56   :  { %p2143_p7 = scmp.ne.s32.totalorder %s116_s21, %s2142_s24  ;;  %p2148_p9 = scmp.lt.s32.totalorder %s2142_s24, %s2142_s24 }
  0x58   :  { %p2149_p10 = por %p2148_p9, %p2147_p8 }
  0x5a   :  { %p2150_p11 = pnand %p2149_p10, %p2143_p7 }
  0x5c   :  { %2153 = shalt.err (!%p2150_p11)
}
  0x5d   :  { %121 = dma.hbm_to_vmem [thread:$0]  %s2559_s10, 2048, %s116_s21, [#allocation12], %s2230_s19, %s2230_s19, %s2231_s1  }
  0x5e   :  { %s2238_s26 = smov [#allocation16]   ;;  %s2239_s12 = smov [#allocation17]  }
  0x5f   :  { %s143_s27 = sshll.u32 %s2238_s26, 4  ;;  %s157_s29 = sshll.u32 %s2239_s12, 4  ;;  %s144_s27 = int_to_ptr.vmem [resolvable:$true] %s143_s27  ;;  %s158_s29 = int_to_ptr.vmem [resolvable:$true] %s157_s29 }
  0x60   :  { %s2162_s6 = scalar_lea.vmem %s144_s27, 2048  ;;  %p2167_p13 = scmp.lt.s32.totalorder %s144_s27, %s144_s27 }
  0x61   :  { %p2163_p12 = scmp.ne.s32.totalorder %s144_s27, %s2162_s6  ;;  %p2168_p0 = scmp.lt.s32.totalorder %s2162_s6, %s2162_s6 }
  0x63   :  { %p2169_p1 = por %p2168_p0, %p2167_p13 }
  0x65   :  { %p2170_p2 = pnand %p2169_p1, %p2163_p12 }
  0x67   :  { %2173 = shalt.err (!%p2170_p2)
}
  0x68   :  { %149 = dma.hbm_to_vmem [thread:$0]  %s2563_s14, 2048, %s144_s27, [#allocation15], %s2230_s19, %s2230_s19, %s2231_s1  }
  0x69   :  { %s2182_s10 = scalar_lea.vmem %s158_s29, 2048  ;;  %p2187_p4 = scmp.lt.s32.totalorder %s158_s29, %s158_s29 }
  0x6a   :  { %p2183_p3 = scmp.ne.s32.totalorder %s158_s29, %s2182_s10  ;;  %p2188_p5 = scmp.lt.s32.totalorder %s2182_s10, %s2182_s10 }
  0x6c   :  { %p2189_p6 = por %p2188_p5, %p2187_p4 }
  0x6e   :  { %p2190_p7 = pnand %p2189_p6, %p2183_p3 }
  0x70   :  { %2193 = shalt.err (!%p2190_p7)
}
  0x71   :  { %163 = dma.hbm_to_vmem [thread:$0]  %s2565_s16, 2048, %s158_s29, [#allocation18], %s2230_s19, %s2230_s19, %s2231_s1  }
  0x72   :  { %2214 = dma.done.wait [#allocation3], 256  }
  0x73   :  { %2215 = vsyncadd [#allocation3], 4294967040 }
  0x74   :  { %2216 = dma.done.wait [#allocation6], 2304  }
  0x75   :  { %2217 = vsyncadd [#allocation6], 4294964992 }
  0x76   :  { %2218 = dma.done.wait [#allocation9], 4096  }
  0x77   :  { %2219 = vsyncadd [#allocation9], 4294963200 }
  0x78   :  { %2220 = dma.done.wait [#allocation12], 4096  }
  0x79   :  { %2221 = vsyncadd [#allocation12], 4294963200 }
  0x7a   :  { %2222 = dma.done.wait [#allocation15], 4096  }
  0x7b   :  { %2223 = vsyncadd [#allocation15], 4294963200 }
  0x7c   :  { %2224 = dma.done.wait [#allocation18], 2048  }
  0x7d   :  { %2225 = vsyncadd [#allocation18], 4294965248  ;;  %v215_v0 = vld [vmem:[#allocation7 + $0x78] sm:$0xff]  ;;  %v214_v1 = vld [vmem:[#allocation7 + $0x70] sm:$0xff]  ;;  %v2240_v18 = vmov 0   ;;  %vm315_vm0 = vcmask 7168  }
  0x7e   :  { %1642 = vmatprep.subr.mxu0 %v215_v0  ;;  %v213_v2 = vld [vmem:[#allocation7 + $0x68] sm:$0xff]  ;;  %v212_v3 = vld [vmem:[#allocation7 + $0x60] sm:$0xff]  ;;  %v2400_v4 = vld [vmem:[#allocation5] sm:$0xff]  ;;  %1974 = vset.pattern.permute.xlu0 %v2240_v18  ;;  %vm2242_vm1 = vmmov 0   ;;  %vm355_vm2 = vcmask 130048   ;;  %s2244_s24 = smov [#allocation19]  }
  0x7f   :  { %1643 = vmatpush3.msra.mxu0 %v215_v0  ;;  %v211_v5 = vld [vmem:[#allocation7 + $0x58] sm:$0xff]  ;;  %1674 = vmatprep.mubr.f32.mxu0 %v2400_v4  ;;  %v210_v6 = vld [vmem:[#allocation7 + $0x50] sm:$0xff]  ;;  %v209_v7 = vld [vmem:[#allocation7 + $0x48] sm:$0xff]  ;;  %v2241_v0 = vmov 0.0   ;;  %s1458_s8 = sshll.u32 %s2244_s24, 4  ;;  %s1459_s8 = int_to_ptr.vmem [resolvable:$true] %s1458_s8 }
  0x80   :  { %1644 = vmatprep.subr.mxu0 %v214_v1  ;;  %v208_v8 = vld [vmem:[#allocation7 + $0x40] sm:$0xff]  ;;  %v207_v9 = vld [vmem:[#allocation7 + $0x38] sm:$0xff]  ;;  %v206_v10 = vld [vmem:[#allocation7 + $0x30] sm:$0xff]  ;;  %1975 = vset.pattern.permute.xlu1 %v2240_v18  ;;  %s2194_s25 = scalar_lea.vmem %s1459_s8, 128  ;;  %p2199_p9 = scmp.lt.s32.totalorder %s1459_s8, %s1459_s8 }
  0x81   :  { %1645 = vmatpush3.msra.mxu0 %v214_v1  ;;  %v205_v11 = vld [vmem:[#allocation7 + $0x28] sm:$0xff]  ;;  %v204_v12 = vld [vmem:[#allocation7 + $0x20] sm:$0xff]  ;;  %v203_v13 = vld [vmem:[#allocation7 + $0x18] sm:$0xff]  ;;  %1677 = vmatprep.subr.mxu1 %v2241_v0  ;;  %p2195_p8 = scmp.ne.s32.totalorder %s1459_s8, %s2194_s25  ;;  %p2200_p10 = scmp.lt.s32.totalorder %s2194_s25, %s2194_s25 }
  0x82   :  { %1646 = vmatprep.subr.mxu0 %v213_v2  ;;  %v202_v14 = vld [vmem:[#allocation7 + $0x10] sm:$0xff]  ;;  %v201_v15 = vld [vmem:[#allocation7 + $0x8] sm:$0xff]  ;;  %v200_v16 = vld [vmem:[#allocation7] sm:$0xff]  ;;  %1681 = vmatprep.mubr.msk.f32.mxu1 %vm2242_vm1, %v2241_v0 }
  0x83   :  { %1647 = vmatpush3.msra.mxu0 %v213_v2  ;;  %v2403_v17 = vld [vmem:[#allocation5 + $0x8] sm:$0xff]  ;;  %v514_v20 = vld [vmem:[#allocation10 + $0x70] sm:$0xff]  ;;  %v513_v21 = vld [vmem:[#allocation10 + $0x68] sm:$0xff]  ;;  %p2201_p11 = por %p2200_p10, %p2199_p9 }
  0x84   :  { %1648 = vmatprep.subr.mxu0 %v212_v3  ;;  %v515_v19 = vld [vmem:[#allocation10 + $0x78] sm:$0xff]  ;;  %v512_v22 = vld [vmem:[#allocation10 + $0x60] sm:$0xff]  ;;  %v510_v24 = vld [vmem:[#allocation10 + $0x50] sm:$0xff] }
  0x85   :  { %1649 = vmatpush3.msra.mxu0 %v212_v3  ;;  %v511_v23 = vld [vmem:[#allocation10 + $0x58] sm:$0xff]  ;;  %v509_v25 = vld [vmem:[#allocation10 + $0x48] sm:$0xff]  ;;  %v508_v26 = vld [vmem:[#allocation10 + $0x40] sm:$0xff]  ;;  %p2202_p12 = pnand %p2201_p11, %p2195_p8 }
  0x86   :  { %1650 = vmatprep.subr.mxu0 %v211_v5  ;;  %v507_v27 = vld [vmem:[#allocation10 + $0x38] sm:$0xff]  ;;  %v506_v28 = vld [vmem:[#allocation10 + $0x30] sm:$0xff]  ;;  %v505_v29 = vld [vmem:[#allocation10 + $0x28] sm:$0xff] }
  0x87   :  { %1651 = vmatpush3.msra.mxu0 %v211_v5  ;;  %v504_v30 = vld [vmem:[#allocation10 + $0x20] sm:$0xff]  ;;  %v503_v31 = vld [vmem:[#allocation10 + $0x18] sm:$0xff]  ;;  %v502_v32 = vld [vmem:[#allocation10 + $0x10] sm:$0xff] }
  0x88   :  { %1652 = vmatprep.subr.mxu0 %v210_v6  ;;  %v1472_v33 = vld [vmem:[%s2552_s3] ss:$0 sm:$0xff]  ;;  %v501_v62 = vld [vmem:[#allocation10 + $0x8] sm:$0xff]  ;;  %v223_v18 = vld [vmem:[#allocation8 + $0x30] sm:$0xff] }
  0x89   :  { %1653 = vmatpush3.msra.mxu0 %v210_v6  ;;  %v500_v2 = vld [vmem:[#allocation10] sm:$0xff] }
  0x8a   :  { %1654 = vmatprep.subr.mxu0 %v209_v7 }
  0x8b   :  { %1655 = vmatpush3.msra.mxu0 %v209_v7 }
  0x8c   :  { %1656 = vmatprep.subr.mxu0 %v208_v8 }
  0x8d   :  { %1657 = vmatpush3.msra.mxu0 %v208_v8 }
  0x8e   :  { %1658 = vmatprep.subr.mxu0 %v207_v9 }
  0x8f   :  { %1659 = vmatpush3.msra.mxu0 %v207_v9  ;;  %v232_v9 = vld [vmem:[#allocation8 + $0x78] sm:$0xff] }
  0x90   :  { %1660 = vmatprep.subr.mxu0 %v206_v10 }
  0x91   :  { %1661 = vmatpush3.msra.mxu0 %v206_v10  ;;  %v2243_v10 = vmov 1.0  }
  0x92   :  { %1662 = vmatprep.subr.mxu0 %v205_v11 }
  0x93   :  { %1663 = vmatpush3.msra.mxu0 %v205_v11  ;;  %v231_v11 = vld [vmem:[#allocation8 + $0x70] sm:$0xff] }
  0x94   :  { %1664 = vmatprep.subr.mxu0 %v204_v12 }
  0x95   :  { %1665 = vmatpush3.msra.mxu0 %v204_v12  ;;  %v230_v12 = vld [vmem:[#allocation8 + $0x68] sm:$0xff] }
  0x96   :  { %1666 = vmatprep.subr.mxu0 %v203_v13 }
  0x97   :  { %1667 = vmatpush3.msra.mxu0 %v203_v13  ;;  %v228_v13 = vld [vmem:[#allocation8 + $0x58] sm:$0xff] }
  0x98   :  { %1668 = vmatprep.subr.mxu0 %v202_v14 }
  0x99   :  { %1669 = vmatpush3.msra.mxu0 %v202_v14  ;;  %v227_v14 = vld [vmem:[#allocation8 + $0x50] sm:$0xff] }
  0x9a   :  { %1670 = vmatprep.subr.mxu0 %v201_v15 }
  0x9b   :  { %1671 = vmatpush3.msra.mxu0 %v201_v15  ;;  %v226_v15 = vld [vmem:[#allocation8 + $0x48] sm:$0xff] }
  0x9c   :  { %1672 = vmatprep.subr.mxu0 %v200_v16 }
  0x9d   :  { %1673 = vmatpush3.msra.mxu0 %v200_v16  ;;  %v225_v16 = vld [vmem:[#allocation8 + $0x40] sm:$0xff] }
  0x9e   :  { %1675 = vmatmul.mubr.f32.vlgmr.msra.gmra.mxu0 %v2403_v17  ;;  %1719 = vmatprep.subr.mxu0 %v515_v19 }
  0x9f   :  { %1751 = vmatprep.mubr.f32.mxu0 %v2400_v4  ;;  %1720 = vmatpush3.msra.mxu0 %v515_v19  ;;  %v222_v19 = vld [vmem:[#allocation8 + $0x28] sm:$0xff] }
  0xa0   :  { %1721 = vmatprep.subr.mxu0 %v514_v20 }
  0xa1   :  { %1722 = vmatpush3.msra.mxu0 %v514_v20  ;;  %v221_v20 = vld [vmem:[#allocation8 + $0x20] sm:$0xff] }
  0xa2   :  { %1723 = vmatprep.subr.mxu0 %v513_v21 }
  0xa3   :  { %1724 = vmatpush3.msra.mxu0 %v513_v21  ;;  %v220_v21 = vld [vmem:[#allocation8 + $0x18] sm:$0xff] }
  0xa4   :  { %1725 = vmatprep.subr.mxu0 %v512_v22 }
  0xa5   :  { %1726 = vmatpush3.msra.mxu0 %v512_v22  ;;  %v219_v22 = vld [vmem:[#allocation8 + $0x10] sm:$0xff] }
  0xa6   :  { %1727 = vmatprep.subr.mxu0 %v511_v23 }
  0xa7   :  { %1728 = vmatpush3.msra.mxu0 %v511_v23  ;;  %v218_v23 = vld [vmem:[#allocation8 + $0x8] sm:$0xff] }
  0xa8   :  { %1729 = vmatprep.subr.mxu0 %v510_v24 }
  0xa9   :  { %1730 = vmatpush3.msra.mxu0 %v510_v24  ;;  %v217_v24 = vld [vmem:[#allocation8] sm:$0xff] }
  0xaa   :  { %1731 = vmatprep.subr.mxu0 %v509_v25 }
  0xab   :  { %1732 = vmatpush3.msra.mxu0 %v509_v25 }
  0xac   :  { %1733 = vmatprep.subr.mxu0 %v508_v26 }
  0xad   :  { %1734 = vmatpush3.msra.mxu0 %v508_v26  ;;  %v2444_v26 = vld [vmem:[#allocation2] sm:$0xff] }
  0xae   :  { %1735 = vmatprep.subr.mxu0 %v507_v27 }
  0xaf   :  { %1736 = vmatpush3.msra.mxu0 %v507_v27 }
  0xb0   :  { %1737 = vmatprep.subr.mxu0 %v506_v28 }
  0xb1   :  { %1738 = vmatpush3.msra.mxu0 %v506_v28 }
  0xb2   :  { %1739 = vmatprep.subr.mxu0 %v505_v29 }
  0xb3   :  { %1740 = vmatpush3.msra.mxu0 %v505_v29 }
  0xb4   :  { %1741 = vmatprep.subr.mxu0 %v504_v30 }
  0xb5   :  { %1742 = vmatpush3.msra.mxu0 %v504_v30  ;;  %v2448_v30 = vld [vmem:[#allocation2 + $0x8] sm:$0xff] }
  0xb6   :  { %1743 = vmatprep.subr.mxu0 %v503_v31 }
  0xb7   :  { %1744 = vmatpush3.msra.mxu0 %v503_v31  ;;  %v696_v31 = vld [vmem:[#allocation11 + $0x78] sm:$0xff] }
  0xb8   :  { %1745 = vmatprep.subr.mxu0 %v502_v32 }
  0xb9   :  { %1746 = vmatpush3.msra.mxu0 %v502_v32  ;;  %v695_v32 = vld [vmem:[#allocation11 + $0x70] sm:$0xff] }
  0xba   :  { %1747 = vmatprep.subr.mxu0 %v501_v62 }
  0xbb   :  { %1748 = vmatpush3.msra.mxu0 %v501_v62  ;;  %v985_v62 = vld [vmem:[#allocation14 + $0x48] sm:$0xff] }
  0xbc   :  { %1749 = vmatprep.subr.mxu0 %v500_v2 }
  0xbd   :  { %1750 = vmatpush3.msra.mxu0 %v500_v2  ;;  %v982_v2 = vld [vmem:[#allocation14 + $0x30] sm:$0xff] }
  0xbe   :  { %1752 = vmatmul.mubr.f32.vlgmr.msra.gmra.mxu0 %v2403_v17  ;;  %1796 = vmatprep.subr.mxu0 %v2241_v0 }
  0xbf   :  { %1800 = vmatprep.mubr.msk.f32.mxu0 %vm2242_vm1, %v2241_v0 }
 0x15e   :  { %v1676_v34 = vpop.f32.mrf.mxu0 }
 0x15f   :  { %v312_v35 = vadd.f32 %v1676_v34, %v1472_v33  ;;  %v693_v34 = vld [vmem:[#allocation11 + $0x60] sm:$0xff] }
 0x160   :  { %v306_v36 = vpop.f32.mrf.mxu0 }
 0x161   :  { %v307_v37 = vadd.f32 %v1472_v33, %v306_v36  ;;  %v317_v38 = vsel %vm315_vm0, %v312_v35, -inf  ;;  %v694_v33 = vld [vmem:[#allocation11 + $0x68] sm:$0xff]  ;;  %v691_v36 = vld [vmem:[#allocation11 + $0x50] sm:$0xff] }
 0x163   :  { %v316_v39 = vsel %vm315_vm0, %v307_v37, -inf }
 0x164   :  { %v318_v40 = vmax.f32 %v316_v39, %v317_v38  ;;  %v689_v38 = vld [vmem:[#allocation11 + $0x40] sm:$0xff]  ;;  %v688_v39 = vld [vmem:[#allocation11 + $0x38] sm:$0xff] }
 0x166   :  { %v319_v41 = vrot.slane %v318_v40, 4 }
 0x168   :  { %v320_v42 = vmax.f32 %v318_v40, %v319_v41  ;;  %v687_v40 = vld [vmem:[#allocation11 + $0x30] sm:$0xff]  ;;  %v686_v41 = vld [vmem:[#allocation11 + $0x28] sm:$0xff] }
 0x16a   :  { %v321_v43 = vrot.slane %v320_v42, 2 }
 0x16c   :  { %v322_v44 = vmax.f32 %v320_v42, %v321_v43  ;;  %v685_v42 = vld [vmem:[#allocation11 + $0x20] sm:$0xff]  ;;  %v684_v43 = vld [vmem:[#allocation11 + $0x18] sm:$0xff] }
 0x16e   :  { %v323_v45 = vrot.slane %v322_v44, 1 }
 0x170   :  { %v324_v46 = vmax.f32 %v322_v44, %v323_v45  ;;  %v683_v44 = vld [vmem:[#allocation11 + $0x10] sm:$0xff]  ;;  %v682_v45 = vld [vmem:[#allocation11 + $0x8] sm:$0xff] }
 0x172   :  { %v325_v47 = vsub.f32 %v307_v37, %v324_v46  ;;  %v326_v48 = vsub.f32 %v312_v35, %v324_v46  ;;  %v692_v35 = vld [vmem:[#allocation11 + $0x58] sm:$0xff]  ;;  %v690_v37 = vld [vmem:[#allocation11 + $0x48] sm:$0xff]  ;;  %v681_v46 = vld [vmem:[#allocation11] sm:$0xff] }
 0x174   :  { %v327_v49 = vmul.f32 1.442695, %v325_v47  ;;  %v329_v50 = vmul.f32 1.442695, %v326_v48  ;;  %v991_v47 = vld [vmem:[#allocation14 + $0x78] sm:$0xff] }
 0x176   :  { %1976 = vpow2.f32 %v327_v49 }
 0x177   :  { %1978 = vpow2.f32 %v329_v50  ;;  %v1474_v50 = vld [vmem:[%s2556_s7] ss:$0 sm:$0xff] }
 0x17e   :  { %v1753_v25 = vpop.f32.mrf.mxu0 }
 0x180   :  { %v582_v28 = vpop.f32.mrf.mxu0 }
 0x183   :  { %v1977_v51 = vpop.eup %1976 }
 0x184   :  { %v1979_v52 = vpop.eup %1978  ;;  %v331_v53 = vsel %vm315_vm0, %v1977_v51, 0.0 }
 0x185   :  { %v332_v54 = vsel %vm315_vm0, %v1979_v52, 0.0 }
 0x186   :  { %v333_v55 = vadd.f32 %v332_v54, %v331_v53 }
 0x188   :  { %v334_v56 = vrot.slane %v333_v55, 4 }
 0x18a   :  { %v335_v57 = vadd.f32 %v334_v56, %v333_v55 }
 0x18c   :  { %v336_v58 = vrot.slane %v335_v57, 2 }
 0x18e   :  { %v337_v59 = vadd.f32 %v336_v58, %v335_v57  ;;  %v990_v57 = vld [vmem:[#allocation14 + $0x70] sm:$0xff]  ;;  %v989_v58 = vld [vmem:[#allocation14 + $0x68] sm:$0xff] }
 0x190   :  { %v338_v60 = vrot.slane %v337_v59, 1 }
 0x192   :  { %v339_v61 = vadd.f32 %v338_v60, %v337_v59  ;;  %v988_v59 = vld [vmem:[#allocation14 + $0x60] sm:$0xff]  ;;  %v987_v60 = vld [vmem:[#allocation14 + $0x58] sm:$0xff] }
 0x194   :  { %1980 = vrcp.f32 %v339_v61  ;;  %v986_v61 = vld [vmem:[#allocation14 + $0x50] sm:$0xff] }
 0x1a1   :  { %v1981_v63 = vpop.eup %1980 }
 0x1a2   :  { %v342_v1 = vmul.f32 %v1981_v63, %v1979_v52  ;;  %v341_v3 = vmul.f32 %v1981_v63, %v1977_v51  ;;  %v984_v63 = vld [vmem:[#allocation14 + $0x40] sm:$0xff] }
 0x1a4   :  { %350 = vperm.xlu0 %1974, %v342_v1   ;;  %v983_v1 = vld [vmem:[#allocation14 + $0x38] sm:$0xff] }
 0x1a8   :  { %345 = vperm.xlu0 %1974, %v341_v3   ;;  %v981_v3 = vld [vmem:[#allocation14 + $0x28] sm:$0xff] }
 0x21f   :  { %v351_v5 = vpop.permute.xlu0 %350 }
 0x220   :  { %v354_v6 = vmul.f32 %v351_v5, %v2403_v17  ;;  %v224_v17 = vld [vmem:[#allocation8 + $0x38] sm:$0xff]  ;;  %v980_v5 = vld [vmem:[#allocation14 + $0x20] sm:$0xff] }
 0x222   :  { %1678 = vmatpush3.msra.mxu1 %v354_v6  ;;  %v979_v6 = vld [vmem:[#allocation14 + $0x18] sm:$0xff] }
 0x223   :  { %v346_v7 = vpop.permute.xlu0 %345  ;;  %1679 = vmatprep.subr.mxu1 %v2241_v0 }
 0x224   :  { %v353_v8 = vmul.f32 %v346_v7, %v2400_v4  ;;  %v229_v4 = vld [vmem:[#allocation8 + $0x60] sm:$0xff]  ;;  %v978_v7 = vld [vmem:[#allocation14 + $0x10] sm:$0xff] }
 0x226   :  { %1680 = vmatpush3.msra.mxu1 %v353_v8  ;;  %v977_v8 = vld [vmem:[#allocation14 + $0x8] sm:$0xff] }
 0x227   :  { %1682 = vmatmul.mubr.msk.f32.vlgmr.msra.gmra.mxu1 %vm355_vm2, %v2243_v10  ;;  %1684 = vmatprep.subr.mxu1 %v2241_v0 }
 0x228   :  { %1685 = vmatpush3.msra.mxu1 %v232_v9  ;;  %1716 = vmatprep.mubr.msk.f32.mxu1 %vm2242_vm1, %v2241_v0  ;;  %v976_v9 = vld [vmem:[#allocation14] sm:$0xff] }
 0x229   :  { %1686 = vmatprep.subr.mxu1 %v2241_v0 }
 0x22a   :  { %1687 = vmatpush3.msra.mxu1 %v231_v11  ;;  %v1477_v11 = vld [vmem:[%s2558_s9] ss:$0 sm:$0xff] }
 0x22b   :  { %1688 = vmatprep.subr.mxu1 %v2241_v0 }
 0x22c   :  { %1689 = vmatpush3.msra.mxu1 %v230_v12 }
 0x22d   :  { %1690 = vmatprep.subr.mxu1 %v2241_v0 }
 0x22e   :  { %1691 = vmatpush3.msra.mxu1 %v229_v4 }
 0x22f   :  { %1692 = vmatprep.subr.mxu1 %v2241_v0 }
 0x230   :  { %1693 = vmatpush3.msra.mxu1 %v228_v13 }
 0x231   :  { %1694 = vmatprep.subr.mxu1 %v2241_v0 }
 0x232   :  { %1695 = vmatpush3.msra.mxu1 %v227_v14 }
 0x233   :  { %1696 = vmatprep.subr.mxu1 %v2241_v0 }
 0x234   :  { %1697 = vmatpush3.msra.mxu1 %v226_v15 }
 0x235   :  { %1698 = vmatprep.subr.mxu1 %v2241_v0 }
 0x236   :  { %1699 = vmatpush3.msra.mxu1 %v225_v16 }
 0x237   :  { %1700 = vmatprep.subr.mxu1 %v2241_v0 }
 0x238   :  { %1701 = vmatpush3.msra.mxu1 %v224_v17 }
 0x239   :  { %1702 = vmatprep.subr.mxu1 %v2241_v0 }
 0x23a   :  { %1703 = vmatpush3.msra.mxu1 %v223_v18 }
 0x23b   :  { %1704 = vmatprep.subr.mxu1 %v2241_v0 }
 0x23c   :  { %1705 = vmatpush3.msra.mxu1 %v222_v19 }
 0x23d   :  { %1706 = vmatprep.subr.mxu1 %v2241_v0 }
 0x23e   :  { %1707 = vmatpush3.msra.mxu1 %v221_v20 }
 0x23f   :  { %1708 = vmatprep.subr.mxu1 %v2241_v0 }
 0x240   :  { %1709 = vmatpush3.msra.mxu1 %v220_v21 }
 0x241   :  { %1710 = vmatprep.subr.mxu1 %v2241_v0 }
 0x242   :  { %1711 = vmatpush3.msra.mxu1 %v219_v22 }
 0x243   :  { %1712 = vmatprep.subr.mxu1 %v2241_v0 }
 0x244   :  { %1713 = vmatpush3.msra.mxu1 %v218_v23 }
 0x245   :  { %1714 = vmatprep.subr.mxu1 %v2241_v0 }
 0x246   :  { %1715 = vmatpush3.msra.mxu1 %v217_v24 }
 0x247   :  { %1754 = vmatprep.subr.mxu1 %v1753_v25 }
 0x2e7   :  { %v425_v27 = vpop.f32.mrf.mxu1 }
 0x2e8   :  { %1717 = vmatmul.mubr.f32.vlgmr.msra.gmra.mxu1 %v425_v27 }
 0x2e9   :  { %1755 = vmatpush3.msra.mxu1 %v1753_v25  ;;  %v1683_v29 = vpop.f32.mrf.mxu1  ;;  %1758 = vmatprep.mubr.msk.f32.mxu1 %vm355_vm2, %v2444_v26 }
 0x2ea   :  { %1756 = vmatprep.subr.mxu1 %v582_v28 }
 0x2eb   :  { %1757 = vmatpush3.msra.mxu1 %v582_v28 }
 0x2ec   :  { %1759 = vmatmul.mubr.msk.f32.vlgmr.msra.gmra.mxu1 %vm355_vm2, %v2448_v30  ;;  %1761 = vmatprep.subr.mxu1 %v696_v31 }
 0x2ed   :  { %1762 = vmatpush3.msra.mxu1 %v696_v31 }
 0x2ee   :  { %1763 = vmatprep.subr.mxu1 %v695_v32 }
 0x2ef   :  { %1764 = vmatpush3.msra.mxu1 %v695_v32 }
 0x2f0   :  { %1765 = vmatprep.subr.mxu1 %v694_v33 }
 0x2f1   :  { %1766 = vmatpush3.msra.mxu1 %v694_v33 }
 0x2f2   :  { %1767 = vmatprep.subr.mxu1 %v693_v34 }
 0x2f3   :  { %1768 = vmatpush3.msra.mxu1 %v693_v34 }
 0x2f4   :  { %1769 = vmatprep.subr.mxu1 %v692_v35 }
 0x2f5   :  { %1770 = vmatpush3.msra.mxu1 %v692_v35 }
 0x2f6   :  { %1771 = vmatprep.subr.mxu1 %v691_v36 }
 0x2f7   :  { %1772 = vmatpush3.msra.mxu1 %v691_v36 }
 0x2f8   :  { %1773 = vmatprep.subr.mxu1 %v690_v37 }
 0x2f9   :  { %1774 = vmatpush3.msra.mxu1 %v690_v37 }
 0x2fa   :  { %1775 = vmatprep.subr.mxu1 %v689_v38 }
 0x2fb   :  { %1776 = vmatpush3.msra.mxu1 %v689_v38 }
 0x2fc   :  { %1777 = vmatprep.subr.mxu1 %v688_v39 }
 0x2fd   :  { %1778 = vmatpush3.msra.mxu1 %v688_v39 }
 0x2fe   :  { %1779 = vmatprep.subr.mxu1 %v687_v40 }
 0x2ff   :  { %1780 = vmatpush3.msra.mxu1 %v687_v40 }
 0x300   :  { %1781 = vmatprep.subr.mxu1 %v686_v41 }
 0x301   :  { %1782 = vmatpush3.msra.mxu1 %v686_v41 }
 0x302   :  { %1783 = vmatprep.subr.mxu1 %v685_v42 }
 0x303   :  { %1784 = vmatpush3.msra.mxu1 %v685_v42 }
 0x304   :  { %1785 = vmatprep.subr.mxu1 %v684_v43 }
 0x305   :  { %1786 = vmatpush3.msra.mxu1 %v684_v43 }
 0x306   :  { %1787 = vmatprep.subr.mxu1 %v683_v44 }
 0x307   :  { %1788 = vmatpush3.msra.mxu1 %v683_v44 }
 0x308   :  { %1789 = vmatprep.subr.mxu1 %v682_v45 }
 0x309   :  { %1790 = vmatpush3.msra.mxu1 %v682_v45 }
 0x30a   :  { %1791 = vmatprep.subr.mxu1 %v681_v46 }
 0x30b   :  { %1792 = vmatpush3.msra.mxu1 %v681_v46 }
 0x30c   :  { %1838 = vmatprep.subr.mxu1 %v991_v47 }
 0x3a8   :  { %v2452_v48 = vpop.f32.mrf.mxu1 }
 0x3aa   :  { %v1718_v49 = vpop.f32.mrf.mxu1 }
 0x3ab   :  { %v713_v49 = vld [vmem:[#allocation13 + $0x78] sm:$0xff] }
 0x3ac   :  { %v1760_v51 = vpop.f32.mrf.mxu1 }
 0x3ad   :  { %v676_v52 = vadd.f32 %v1760_v51, %v1474_v50  ;;  %v711_v51 = vld [vmem:[#allocation13 + $0x68] sm:$0xff] }
 0x3ae   :  { %v670_v53 = vpop.f32.mrf.mxu1 }
 0x3af   :  { %v671_v54 = vadd.f32 %v1474_v50, %v670_v53  ;;  %v2459_v56 = vmax.f32 %v676_v52, 0.0  ;;  %v712_v50 = vld [vmem:[#allocation13 + $0x70] sm:$0xff]  ;;  %v710_v52 = vld [vmem:[#allocation13 + $0x60] sm:$0xff]  ;;  %v709_v53 = vld [vmem:[#allocation13 + $0x58] sm:$0xff] }
 0x3b1   :  { %v2457_v55 = vmax.f32 %v671_v54, 0.0  ;;  %v708_v54 = vld [vmem:[#allocation13 + $0x50] sm:$0xff] }
 0x3b3   :  { %1793 = vmatprep.mubr.f32.mxu1 %v2457_v55 }
 0x3b4   :  { %1794 = vmatmul.mubr.f32.vlgmr.msra.gmra.mxu1 %v2459_v56 }
 0x3b5   :  { %1839 = vmatpush3.msra.mxu1 %v991_v47  ;;  %1870 = vmatprep.mubr.f32.mxu1 %v2457_v55 }
 0x3b6   :  { %1840 = vmatprep.subr.mxu1 %v990_v57 }
 0x3b7   :  { %1841 = vmatpush3.msra.mxu1 %v990_v57  ;;  %v705_v57 = vld [vmem:[#allocation13 + $0x38] sm:$0xff] }
 0x3b8   :  { %1842 = vmatprep.subr.mxu1 %v989_v58 }
 0x3b9   :  { %1843 = vmatpush3.msra.mxu1 %v989_v58  ;;  %v704_v58 = vld [vmem:[#allocation13 + $0x30] sm:$0xff] }
 0x3ba   :  { %1844 = vmatprep.subr.mxu1 %v988_v59 }
 0x3bb   :  { %1845 = vmatpush3.msra.mxu1 %v988_v59  ;;  %v703_v59 = vld [vmem:[#allocation13 + $0x28] sm:$0xff] }
 0x3bc   :  { %1846 = vmatprep.subr.mxu1 %v987_v60 }
 0x3bd   :  { %1847 = vmatpush3.msra.mxu1 %v987_v60  ;;  %v702_v60 = vld [vmem:[#allocation13 + $0x20] sm:$0xff] }
 0x3be   :  { %1848 = vmatprep.subr.mxu1 %v986_v61 }
 0x3bf   :  { %1849 = vmatpush3.msra.mxu1 %v986_v61  ;;  %v701_v61 = vld [vmem:[#allocation13 + $0x18] sm:$0xff] }
 0x3c0   :  { %1850 = vmatprep.subr.mxu1 %v985_v62 }
 0x3c1   :  { %1851 = vmatpush3.msra.mxu1 %v985_v62  ;;  %v700_v62 = vld [vmem:[#allocation13 + $0x10] sm:$0xff] }
 0x3c2   :  { %1852 = vmatprep.subr.mxu1 %v984_v63 }
 0x3c3   :  { %1853 = vmatpush3.msra.mxu1 %v984_v63  ;;  %v699_v63 = vld [vmem:[#allocation13 + $0x8] sm:$0xff] }
 0x3c4   :  { %1854 = vmatprep.subr.mxu1 %v983_v1 }
 0x3c5   :  { %1855 = vmatpush3.msra.mxu1 %v983_v1  ;;  %v698_v1 = vld [vmem:[#allocation13] sm:$0xff] }
 0x3c6   :  { %1856 = vmatprep.subr.mxu1 %v982_v2 }
 0x3c7   :  { %1857 = vmatpush3.msra.mxu1 %v982_v2 }
 0x3c8   :  { %1858 = vmatprep.subr.mxu1 %v981_v3 }
 0x3c9   :  { %1859 = vmatpush3.msra.mxu1 %v981_v3 }
 0x3ca   :  { %1860 = vmatprep.subr.mxu1 %v980_v5 }
 0x3cb   :  { %1861 = vmatpush3.msra.mxu1 %v980_v5 }
 0x3cc   :  { %1862 = vmatprep.subr.mxu1 %v979_v6 }
 0x3cd   :  { %1863 = vmatpush3.msra.mxu1 %v979_v6 }
 0x3ce   :  { %1864 = vmatprep.subr.mxu1 %v978_v7 }
 0x3cf   :  { %1865 = vmatpush3.msra.mxu1 %v978_v7  ;;  %v1166_v7 = vld [vmem:[#allocation16 + $0x78] sm:$0xff] }
 0x3d0   :  { %1866 = vmatprep.subr.mxu1 %v977_v8 }
 0x3d1   :  { %1867 = vmatpush3.msra.mxu1 %v977_v8  ;;  %v1165_v8 = vld [vmem:[#allocation16 + $0x70] sm:$0xff] }
 0x3d2   :  { %1868 = vmatprep.subr.mxu1 %v976_v9 }
 0x3d3   :  { %1869 = vmatpush3.msra.mxu1 %v976_v9  ;;  %v1164_v9 = vld [vmem:[#allocation16 + $0x68] sm:$0xff] }
 0x3d4   :  { %1871 = vmatmul.mubr.f32.vlgmr.msra.gmra.mxu1 %v2459_v56  ;;  %1915 = vmatprep.subr.mxu1 %v2241_v0 }
 0x3d5   :  { %1919 = vmatprep.mubr.msk.f32.mxu1 %vm2242_vm1, %v2241_v0 }
 0x474   :  { %v1795_v12 = vpop.f32.mrf.mxu1 }
 0x475   :  { %v793_v4 = vadd.f32 %v1795_v12, %v1477_v11  ;;  %v1162_v12 = vld [vmem:[#allocation16 + $0x58] sm:$0xff] }
 0x476   :  { %v787_v13 = vpop.f32.mrf.mxu1 }
 0x477   :  { %v788_v14 = vadd.f32 %v1477_v11, %v787_v13  ;;  %v797_v15 = vsel %vm315_vm0, %v793_v4, -inf  ;;  %v1163_v11 = vld [vmem:[#allocation16 + $0x60] sm:$0xff] }
 0x478   :  { %v1159_v13 = vld [vmem:[#allocation16 + $0x40] sm:$0xff] }
 0x479   :  { %v796_v16 = vsel %vm315_vm0, %v788_v14, -inf }
 0x47a   :  { %v798_v17 = vmax.f32 %v796_v16, %v797_v15  ;;  %v1156_v15 = vld [vmem:[#allocation16 + $0x28] sm:$0xff]  ;;  %v1155_v16 = vld [vmem:[#allocation16 + $0x20] sm:$0xff] }
 0x47c   :  { %v799_v18 = vrot.slane %v798_v17, 4 }
 0x47e   :  { %v800_v19 = vmax.f32 %v798_v17, %v799_v18  ;;  %v1154_v17 = vld [vmem:[#allocation16 + $0x18] sm:$0xff]  ;;  %v1153_v18 = vld [vmem:[#allocation16 + $0x10] sm:$0xff] }
 0x480   :  { %v801_v20 = vrot.slane %v800_v19, 2 }
 0x482   :  { %v802_v21 = vmax.f32 %v800_v19, %v801_v20  ;;  %v1152_v19 = vld [vmem:[#allocation16 + $0x8] sm:$0xff]  ;;  %v1151_v20 = vld [vmem:[#allocation16] sm:$0xff] }
 0x484   :  { %v803_v22 = vrot.slane %v802_v21, 1 }
 0x486   :  { %v804_v23 = vmax.f32 %v802_v21, %v803_v22  ;;  %v233_v21 = vld [vmem:[%s2554_s5] sm:$0x1] }
 0x487   :  { %v714_v22 = vld [vmem:[%s2560_s11] sm:$0x1] }
 0x488   :  { %v805_v24 = vsub.f32 %v788_v14, %v804_v23  ;;  %v806_v25 = vsub.f32 %v793_v4, %v804_v23  ;;  %v1161_v4 = vld [vmem:[#allocation16 + $0x50] sm:$0xff] }
 0x489   :  { %v1157_v14 = vld [vmem:[#allocation16 + $0x30] sm:$0xff] }
 0x48a   :  { %v807_v27 = vmul.f32 1.442695, %v805_v24  ;;  %v809_v28 = vmul.f32 1.442695, %v806_v25  ;;  %v496_v24 = vadd.f32 %v2452_v48, %v233_v21  ;;  %v1482_v48 = vld [vmem:[%s2564_s15] ss:$0 sm:$0xff] }
 0x48b   :  { %v1170_v21 = vld [vmem:[#allocation17 + $0x10] sm:$0xff] }
 0x48c   :  { %1982 = vpow2.f32 %v807_v27 }
 0x48d   :  { %1984 = vpow2.f32 %v809_v28 }
 0x494   :  { %v1872_v2 = vpop.f32.mrf.mxu1 }
 0x496   :  { %v1058_v5 = vpop.f32.mrf.mxu1 }
 0x499   :  { %v1983_v29 = vpop.eup %1982 }
 0x49a   :  { %v1985_v31 = vpop.eup %1984  ;;  %v811_v32 = vsel %vm315_vm0, %v1983_v29, 0.0 }
 0x49b   :  { %v812_v33 = vsel %vm315_vm0, %v1985_v31, 0.0 }
 0x49c   :  { %v813_v34 = vadd.f32 %v812_v33, %v811_v32 }
 0x49e   :  { %v814_v35 = vrot.slane %v813_v34, 4 }
 0x4a0   :  { %v815_v36 = vadd.f32 %v814_v35, %v813_v34 }
 0x4a2   :  { %v816_v37 = vrot.slane %v815_v36, 2 }
 0x4a4   :  { %v817_v38 = vadd.f32 %v816_v37, %v815_v36 }
 0x4a6   :  { %v818_v39 = vrot.slane %v817_v38, 1 }
 0x4a8   :  { %v819_v40 = vadd.f32 %v818_v39, %v817_v38 }
 0x4aa   :  { %1986 = vrcp.f32 %v819_v40 }
 0x4b7   :  { %v1987_v41 = vpop.eup %1986 }
 0x4b8   :  { %v822_v42 = vmul.f32 %v1987_v41, %v1985_v31  ;;  %v821_v43 = vmul.f32 %v1987_v41, %v1983_v29  ;;  %v1479_v29 = vld [vmem:[%s2562_s13] ss:$0 sm:$0xff] }
 0x4ba   :  { %830 = vperm.xlu1 %1975, %v822_v42  }
 0x4be   :  { %825 = vperm.xlu1 %1975, %v821_v43  }
 0x535   :  { %v831_v44 = vpop.permute.xlu1 %830 }
 0x536   :  { %v834_v45 = vmul.f32 %v831_v44, %v2459_v56  ;;  %v706_v56 = vld [vmem:[#allocation13 + $0x40] sm:$0xff] }
 0x538   :  { %1797 = vmatpush3.msra.mxu0 %v834_v45 }
 0x539   :  { %v826_v46 = vpop.permute.xlu1 %825  ;;  %1798 = vmatprep.subr.mxu0 %v2241_v0 }
 0x53a   :  { %v833_v47 = vmul.f32 %v826_v46, %v2457_v55  ;;  %v707_v55 = vld [vmem:[#allocation13 + $0x48] sm:$0xff] }
 0x53c   :  { %1799 = vmatpush3.msra.mxu0 %v833_v47 }
 0x53d   :  { %1801 = vmatmul.mubr.msk.f32.vlgmr.msra.gmra.mxu0 %vm355_vm2, %v2243_v10  ;;  %1803 = vmatprep.subr.mxu0 %v2241_v0 }
 0x53e   :  { %1804 = vmatpush3.msra.mxu0 %v713_v49  ;;  %1835 = vmatprep.mubr.msk.f32.mxu0 %vm2242_vm1, %v2241_v0 }
 0x53f   :  { %1805 = vmatprep.subr.mxu0 %v2241_v0 }
 0x540   :  { %1806 = vmatpush3.msra.mxu0 %v712_v50 }
 0x541   :  { %1807 = vmatprep.subr.mxu0 %v2241_v0 }
 0x542   :  { %1808 = vmatpush3.msra.mxu0 %v711_v51 }
 0x543   :  { %1809 = vmatprep.subr.mxu0 %v2241_v0 }
 0x544   :  { %1810 = vmatpush3.msra.mxu0 %v710_v52 }
 0x545   :  { %1811 = vmatprep.subr.mxu0 %v2241_v0 }
 0x546   :  { %1812 = vmatpush3.msra.mxu0 %v709_v53 }
 0x547   :  { %1813 = vmatprep.subr.mxu0 %v2241_v0 }
 0x548   :  { %1814 = vmatpush3.msra.mxu0 %v708_v54 }
 0x549   :  { %1815 = vmatprep.subr.mxu0 %v2241_v0 }
 0x54a   :  { %1816 = vmatpush3.msra.mxu0 %v707_v55 }
 0x54b   :  { %1817 = vmatprep.subr.mxu0 %v2241_v0 }
 0x54c   :  { %1818 = vmatpush3.msra.mxu0 %v706_v56 }
 0x54d   :  { %1819 = vmatprep.subr.mxu0 %v2241_v0 }
 0x54e   :  { %1820 = vmatpush3.msra.mxu0 %v705_v57 }
 0x54f   :  { %1821 = vmatprep.subr.mxu0 %v2241_v0 }
 0x550   :  { %1822 = vmatpush3.msra.mxu0 %v704_v58 }
 0x551   :  { %1823 = vmatprep.subr.mxu0 %v2241_v0 }
 0x552   :  { %1824 = vmatpush3.msra.mxu0 %v703_v59 }
 0x553   :  { %1825 = vmatprep.subr.mxu0 %v2241_v0 }
 0x554   :  { %1826 = vmatpush3.msra.mxu0 %v702_v60 }
 0x555   :  { %1827 = vmatprep.subr.mxu0 %v2241_v0 }
 0x556   :  { %1828 = vmatpush3.msra.mxu0 %v701_v61 }
 0x557   :  { %1829 = vmatprep.subr.mxu0 %v2241_v0 }
 0x558   :  { %1830 = vmatpush3.msra.mxu0 %v700_v62 }
 0x559   :  { %1831 = vmatprep.subr.mxu0 %v2241_v0 }
 0x55a   :  { %1832 = vmatpush3.msra.mxu0 %v699_v63 }
 0x55b   :  { %1833 = vmatprep.subr.mxu0 %v2241_v0 }
 0x55c   :  { %1834 = vmatpush3.msra.mxu0 %v698_v1 }
 0x55d   :  { %1873 = vmatprep.subr.mxu0 %v1872_v2 }
 0x5fd   :  { %v901_v3 = vpop.f32.mrf.mxu0 }
 0x5fe   :  { %1836 = vmatmul.mubr.f32.vlgmr.msra.gmra.mxu0 %v901_v3 }
 0x5ff   :  { %1874 = vmatpush3.msra.mxu0 %v1872_v2  ;;  %v1802_v6 = vpop.f32.mrf.mxu0  ;;  %1877 = vmatprep.mubr.msk.f32.mxu0 %vm355_vm2, %v2444_v26  ;;  %v1160_v26 = vld [vmem:[#allocation16 + $0x48] sm:$0xff] }
 0x600   :  { %1875 = vmatprep.subr.mxu0 %v1058_v5 }
 0x601   :  { %1876 = vmatpush3.msra.mxu0 %v1058_v5 }
 0x602   :  { %1878 = vmatmul.mubr.msk.f32.vlgmr.msra.gmra.mxu0 %vm355_vm2, %v2448_v30  ;;  %1880 = vmatprep.subr.mxu0 %v1166_v7  ;;  %v1158_v30 = vld [vmem:[#allocation16 + $0x38] sm:$0xff] }
 0x603   :  { %1881 = vmatpush3.msra.mxu0 %v1166_v7 }
 0x604   :  { %1882 = vmatprep.subr.mxu0 %v1165_v8 }
 0x605   :  { %1883 = vmatpush3.msra.mxu0 %v1165_v8 }
 0x606   :  { %1884 = vmatprep.subr.mxu0 %v1164_v9 }
 0x607   :  { %1885 = vmatpush3.msra.mxu0 %v1164_v9 }
 0x608   :  { %1886 = vmatprep.subr.mxu0 %v1163_v11 }
 0x609   :  { %1887 = vmatpush3.msra.mxu0 %v1163_v11 }
 0x60a   :  { %1888 = vmatprep.subr.mxu0 %v1162_v12 }
 0x60b   :  { %1889 = vmatpush3.msra.mxu0 %v1162_v12  ;;  %v1183_v12 = vld [vmem:[#allocation17 + $0x78] sm:$0xff] }
 0x60c   :  { %1890 = vmatprep.subr.mxu0 %v1161_v4 }
 0x60d   :  { %1891 = vmatpush3.msra.mxu0 %v1161_v4  ;;  %v1182_v4 = vld [vmem:[#allocation17 + $0x70] sm:$0xff] }
 0x60e   :  { %1892 = vmatprep.subr.mxu0 %v1160_v26 }
 0x60f   :  { %1893 = vmatpush3.msra.mxu0 %v1160_v26  ;;  %v1181_v26 = vld [vmem:[#allocation17 + $0x68] sm:$0xff] }
 0x610   :  { %1894 = vmatprep.subr.mxu0 %v1159_v13 }
 0x611   :  { %1895 = vmatpush3.msra.mxu0 %v1159_v13  ;;  %v1180_v13 = vld [vmem:[#allocation17 + $0x60] sm:$0xff] }
 0x612   :  { %1896 = vmatprep.subr.mxu0 %v1158_v30 }
 0x613   :  { %1897 = vmatpush3.msra.mxu0 %v1158_v30  ;;  %v1179_v30 = vld [vmem:[#allocation17 + $0x58] sm:$0xff] }
 0x614   :  { %1898 = vmatprep.subr.mxu0 %v1157_v14 }
 0x615   :  { %1899 = vmatpush3.msra.mxu0 %v1157_v14  ;;  %v1177_v14 = vld [vmem:[#allocation17 + $0x48] sm:$0xff] }
 0x616   :  { %1900 = vmatprep.subr.mxu0 %v1156_v15 }
 0x617   :  { %1901 = vmatpush3.msra.mxu0 %v1156_v15  ;;  %v1176_v15 = vld [vmem:[#allocation17 + $0x40] sm:$0xff] }
 0x618   :  { %1902 = vmatprep.subr.mxu0 %v1155_v16 }
 0x619   :  { %1903 = vmatpush3.msra.mxu0 %v1155_v16  ;;  %v1175_v16 = vld [vmem:[#allocation17 + $0x38] sm:$0xff] }
 0x61a   :  { %1904 = vmatprep.subr.mxu0 %v1154_v17 }
 0x61b   :  { %1905 = vmatpush3.msra.mxu0 %v1154_v17  ;;  %v1174_v17 = vld [vmem:[#allocation17 + $0x30] sm:$0xff] }
 0x61c   :  { %1906 = vmatprep.subr.mxu0 %v1153_v18 }
 0x61d   :  { %1907 = vmatpush3.msra.mxu0 %v1153_v18  ;;  %v1173_v18 = vld [vmem:[#allocation17 + $0x28] sm:$0xff] }
 0x61e   :  { %1908 = vmatprep.subr.mxu0 %v1152_v19 }
 0x61f   :  { %1909 = vmatpush3.msra.mxu0 %v1152_v19  ;;  %v1172_v19 = vld [vmem:[#allocation17 + $0x20] sm:$0xff] }
 0x620   :  { %1910 = vmatprep.subr.mxu0 %v1151_v20 }
 0x621   :  { %1911 = vmatpush3.msra.mxu0 %v1151_v20  ;;  %v1171_v20 = vld [vmem:[#allocation17 + $0x18] sm:$0xff] }
 0x6be   :  { %v971_v23 = vpop.f32.mrf.mxu0 }
 0x6bf   :  { %v972_v25 = vadd.f32 %v971_v23, %v714_v22  ;;  %v1169_v22 = vld [vmem:[#allocation17 + $0x8] sm:$0xff]  ;;  %v1168_v23 = vld [vmem:[#allocation17] sm:$0xff] }
 0x6c0   :  { %v1837_v27 = vpop.f32.mrf.mxu0 }
 0x6c1   :  { %v2509_v28 = vadd.f32 %v972_v25, %v496_v24  ;;  %v1447_v27 = vlaneseq }
 0x6c2   :  { %v1879_v31 = vpop.f32.mrf.mxu0 }
 0x6c3   :  { %v1146_v32 = vadd.f32 %v1879_v31, %v1479_v29  ;;  %v1448_v31 = vshrl.u32 %v1447_v27, 7 }
 0x6c4   :  { %v1140_v33 = vpop.f32.mrf.mxu0 }
 0x6c5   :  { %v1141_v34 = vadd.f32 %v1479_v29, %v1140_v33  ;;  %v1150_v36 = vmax.f32 %v1146_v32, 0.0  ;;  %v1184_v29 = vld [vmem:[%s2566_s17] sm:$0x1] }
 0x6c7   :  { %v1149_v35 = vmax.f32 %v1141_v34, 0.0 }
 0x6c9   :  { %1912 = vmatprep.mubr.f32.mxu0 %v1149_v35 }
 0x6ca   :  { %1913 = vmatmul.mubr.f32.vlgmr.msra.gmra.mxu0 %v1150_v36 }
 0x78a   :  { %v1914_v37 = vpop.f32.mrf.mxu0 }
 0x78b   :  { %v1263_v38 = vadd.f32 %v1914_v37, %v1482_v48 }
 0x78c   :  { %v1257_v39 = vpop.f32.mrf.mxu0 }
 0x78d   :  { %v1258_v40 = vadd.f32 %v1482_v48, %v1257_v39  ;;  %v1267_v41 = vsel %vm315_vm0, %v1263_v38, -inf }
 0x78f   :  { %v1266_v42 = vsel %vm315_vm0, %v1258_v40, -inf }
 0x790   :  { %v1268_v43 = vmax.f32 %v1266_v42, %v1267_v41 }
 0x792   :  { %v1269_v44 = vrot.slane %v1268_v43, 4 }
 0x794   :  { %v1270_v45 = vmax.f32 %v1268_v43, %v1269_v44 }
 0x796   :  { %v1271_v46 = vrot.slane %v1270_v45, 2 }
 0x798   :  { %v1272_v47 = vmax.f32 %v1270_v45, %v1271_v46 }
 0x79a   :  { %v1273_v49 = vrot.slane %v1272_v47, 1 }
 0x79c   :  { %v1274_v50 = vmax.f32 %v1272_v47, %v1273_v49 }
 0x79e   :  { %v1275_v51 = vsub.f32 %v1258_v40, %v1274_v50  ;;  %v1276_v52 = vsub.f32 %v1263_v38, %v1274_v50 }
 0x7a0   :  { %v1277_v53 = vmul.f32 1.442695, %v1275_v51  ;;  %v1279_v54 = vmul.f32 1.442695, %v1276_v52 }
 0x7a2   :  { %1988 = vpow2.f32 %v1277_v53 }
 0x7a3   :  { %1990 = vpow2.f32 %v1279_v54 }
 0x7af   :  { %v1989_v55 = vpop.eup %1988 }
 0x7b0   :  { %v1991_v56 = vpop.eup %1990  ;;  %v1281_v57 = vsel %vm315_vm0, %v1989_v55, 0.0 }
 0x7b1   :  { %v1282_v58 = vsel %vm315_vm0, %v1991_v56, 0.0 }
 0x7b2   :  { %v1283_v59 = vadd.f32 %v1282_v58, %v1281_v57 }
 0x7b4   :  { %v1284_v60 = vrot.slane %v1283_v59, 4 }
 0x7b6   :  { %v1285_v61 = vadd.f32 %v1284_v60, %v1283_v59 }
 0x7b8   :  { %v1286_v62 = vrot.slane %v1285_v61, 2 }
 0x7ba   :  { %v1287_v63 = vadd.f32 %v1286_v62, %v1285_v61 }
 0x7bc   :  { %v1288_v1 = vrot.slane %v1287_v63, 1 }
 0x7be   :  { %v1289_v2 = vadd.f32 %v1288_v1, %v1287_v63 }
 0x7c0   :  { %1992 = vrcp.f32 %v1289_v2 }
 0x7cd   :  { %v1993_v3 = vpop.eup %1992 }
 0x7ce   :  { %v1292_v5 = vmul.f32 %v1993_v3, %v1991_v56  ;;  %v1291_v6 = vmul.f32 %v1993_v3, %v1989_v55 }
 0x7d0   :  { %1300 = vperm.xlu0 %1974, %v1292_v5   ;;  %1295 = vperm.xlu1 %1975, %v1291_v6  }
 0x84b   :  { %v1301_v7 = vpop.permute.xlu0 %1300  ;;  %v1296_v8 = vpop.permute.xlu1 %1295 }
 0x84c   :  { %v1304_v9 = vmul.f32 %v1301_v7, %v1150_v36  ;;  %v1303_v11 = vmul.f32 %v1296_v8, %v1149_v35  ;;  %v1449_v36 = vsub.s32 0, %v1448_v31 }
 0x84e   :  { %1916 = vmatpush3.msra.mxu1 %v1304_v9 }
 0x84f   :  { %1917 = vmatprep.subr.mxu1 %v2241_v0 }
 0x850   :  { %1918 = vmatpush3.msra.mxu1 %v1303_v11 }
 0x851   :  { %1920 = vmatmul.mubr.msk.f32.vlgmr.msra.gmra.mxu1 %vm355_vm2, %v2243_v10  ;;  %1922 = vmatprep.subr.mxu1 %v2241_v0  ;;  %v1178_v10 = vld [vmem:[#allocation17 + $0x50] sm:$0xff] }
 0x852   :  { %1923 = vmatpush3.msra.mxu1 %v1183_v12  ;;  %1954 = vmatprep.mubr.msk.f32.mxu1 %vm2242_vm1, %v2241_v0 }
 0x853   :  { %1924 = vmatprep.subr.mxu1 %v2241_v0 }
 0x854   :  { %1925 = vmatpush3.msra.mxu1 %v1182_v4 }
 0x855   :  { %1926 = vmatprep.subr.mxu1 %v2241_v0 }
 0x856   :  { %1927 = vmatpush3.msra.mxu1 %v1181_v26 }
 0x857   :  { %1928 = vmatprep.subr.mxu1 %v2241_v0 }
 0x858   :  { %1929 = vmatpush3.msra.mxu1 %v1180_v13 }
 0x859   :  { %1930 = vmatprep.subr.mxu1 %v2241_v0 }
 0x85a   :  { %1931 = vmatpush3.msra.mxu1 %v1179_v30 }
 0x85b   :  { %1932 = vmatprep.subr.mxu1 %v2241_v0 }
 0x85c   :  { %1933 = vmatpush3.msra.mxu1 %v1178_v10 }
 0x85d   :  { %1934 = vmatprep.subr.mxu1 %v2241_v0 }
 0x85e   :  { %1935 = vmatpush3.msra.mxu1 %v1177_v14 }
 0x85f   :  { %1936 = vmatprep.subr.mxu1 %v2241_v0 }
 0x860   :  { %1937 = vmatpush3.msra.mxu1 %v1176_v15 }
 0x861   :  { %1938 = vmatprep.subr.mxu1 %v2241_v0 }
 0x862   :  { %1939 = vmatpush3.msra.mxu1 %v1175_v16 }
 0x863   :  { %1940 = vmatprep.subr.mxu1 %v2241_v0 }
 0x864   :  { %1941 = vmatpush3.msra.mxu1 %v1174_v17 }
 0x865   :  { %1942 = vmatprep.subr.mxu1 %v2241_v0 }
 0x866   :  { %1943 = vmatpush3.msra.mxu1 %v1173_v18 }
 0x867   :  { %1944 = vmatprep.subr.mxu1 %v2241_v0 }
 0x868   :  { %1945 = vmatpush3.msra.mxu1 %v1172_v19 }
 0x869   :  { %1946 = vmatprep.subr.mxu1 %v2241_v0 }
 0x86a   :  { %1947 = vmatpush3.msra.mxu1 %v1171_v20 }
 0x86b   :  { %1948 = vmatprep.subr.mxu1 %v2241_v0 }
 0x86c   :  { %1949 = vmatpush3.msra.mxu1 %v1170_v21 }
 0x86d   :  { %1950 = vmatprep.subr.mxu1 %v2241_v0 }
 0x86e   :  { %1951 = vmatpush3.msra.mxu1 %v1169_v22 }
 0x86f   :  { %1952 = vmatprep.subr.mxu1 %v2241_v0 }
 0x870   :  { %1953 = vmatpush3.msra.mxu1 %v1168_v23 }
 0x911   :  { %v1371_v24 = vpop.f32.mrf.mxu1 }
 0x912   :  { %1955 = vmatmul.mubr.f32.vlgmr.msra.gmra.mxu1 %v1371_v24 }
 0x913   :  { %v1921_v25 = vpop.f32.mrf.mxu1 }
 0x9d2   :  { %v1441_v32 = vpop.f32.mrf.mxu1 }
 0x9d3   :  { %v1442_v33 = vadd.f32 %v1441_v32, %v1184_v29 }
 0x9d4   :  { %v1956_v34 = vpop.f32.mrf.mxu1 }
 0x9d5   :  { %v1445_v35 = vadd.f32 %v1442_v33, %v2509_v28 }
 0x9d7   :  { %v1446_v0 = vmul.f32 0.33333334, %v1445_v35 }
 0x9d9   :  { %v1450_v48 = vrot.slane %v1446_v0, %v1449_v36 }
 0x9db   :  { %1451 = vst [vmem:[#allocation19] sm:$0xff] %v1450_v48 }
 0x9dc   :  { %2205 = shalt.err (!%p2202_p12)
}
 0x9dd   :  { %1461 = dma.vmem_to_hbm [thread:$0]  %s1459_s8, 128, %s2567_s18, [#allocation4]  }
 0x9de   :  { %2226 = dma.done.wait [#allocation4], 128  }
 0x9df   :  { %2227 = vsyncadd [#allocation4], 4294967168 }
 0x9e0   :  { %1465 = vsyncpa [#allocation3], 1 }
 0x9e1   :  { %1466 = vsyncpa [#allocation6], 1 }
 0x9e2   :  { %1467 = vsyncpa [#allocation9], 1 }
 0x9e3   :  { %1468 = vsyncpa [#allocation12], 1 }
 0x9e4   :  { %1469 = vsyncpa [#allocation15], 1 }
 0x9e5   :  { %1470 = vsyncpa [#allocation18], 1 }
 0x9e6   :  { %1471 = vsyncpa [#allocation4], 1 }

</bundles_post_ra>
